<compile_context>
chip_gen: v7x
topology: tpu7x:2x2x1
jax: 0.10.0
libtpu: 0.0.40
codegen_flags: <defaults>
</compile_context>

<pallas_src>
import functools

import jax
import jax.numpy as jnp
from jax.experimental import pallas as pl
from jax.experimental.pallas import tpu as pltpu

K_SPATIAL = 3  # number of adjacency partitions per graph (ST-GCN style)


# ------------------------------ Pallas kernel -------------------------------
def _gcn_fused_kernel(x_ref, w_ref, b_ref, o_ref):
    """Fused GCN_List forward for one row-tile.

    x_ref: (tile, D)        bf16 input rows, D = 128-padded V * Cuni
    w_ref: (G, L, D, D)     bf16 Kronecker-fused per-(graph, layer) weights
    b_ref: (G, L, 1, D)     f32 lane-dense biases
    o_ref: (G, tile, D)     bf16 per-graph outputs (last layer, ReLU applied)
    """
    G = w_ref.shape[0]
    L = w_ref.shape[1]
    x0 = x_ref[...]                      # one DMA'd tile, reused by all graphs
    for g in range(G):                   # G, L small & static -> unrolled
        h = x0                           # well-defined even for L == 0
        for l in range(L):
            acc = jnp.dot(h, w_ref[g, l],
                          preferred_element_type=jnp.float32)   # MXU, f32 acc
            h = jnp.maximum(acc + b_ref[g, l], 0.0).astype(jnp.bfloat16)
        o_ref[g] = h                     # bf16 lane-dense store


# ------------------------------ sizing helpers ------------------------------
def _vmem_budget_bytes():
    """~75% of physical VMEM (v5e/v6e: 128 MiB, v7x: 64 MiB); safe fallback."""
    cap = 64 * 1024 * 1024
    try:
        info = pltpu.get_tpu_info()
        cap = int(getattr(info, "vmem_capacity_bytes", None)
                  or getattr(info, "vmem_size_bytes", None) or cap)
    except Exception:
        pass
    return (cap * 3) // 4


def _pick_tile(nt, d, g, resident_bytes, vmem_budget):
    """Row tile: multiple of 8 (>=16 when NT allows), padding- & VMEM-aware."""
    # Per-row pipelined VMEM: bf16 x-tile + bf16 (G, tile, D) out-tile, 2-deep.
    per_row = 2 * (d * 2) + 2 * (g * d * 2)
    avail = max(vmem_budget - resident_bytes - (2 << 20), per_row * 16)
    cap = int(max(8, min(1024, (avail // per_row) // 8 * 8)))
    nsteps = max(2, pl.cdiv(nt, cap))     # >=2 steps: pipelining + 2 TCs (v7x)
    nsteps += nsteps % 2                  # even step count balances v7x cores
    tile = 8 * pl.cdiv(nt, 8 * nsteps)    # padding-aware: <8 dead rows total
    if nt >= 32:
        tile = max(tile, 16)              # bf16 packs 16 rows per vreg
    return int(max(8, min(tile, cap)))


# ------------------------------ forward wrapper ------------------------------
def gcn_list_forward(w_fused, b_fused, x_nctv, *, cout, cuni, v_nodes):
    """x_nctv: (N, C, T, V) -> (N, cout, T, V, G)  (matches torch.stack(dim=-1))."""
    N, Cin, T, V = x_nctv.shape
    assert V == v_nodes
    G, L, D, _ = w_fused.shape
    d_nodes = V * cuni                    # real (unpadded) lane width
    NT = N * T

    # (N, C, T, V) -> (N, T, V, C), zero-pad channels to Cuni, flatten, then
    # zero-pad the flattened node*channel axis up to the 128-aligned D.
    xt = jnp.transpose(x_nctv, (0, 2, 3, 1))
    if Cin < cuni:
        xt = jnp.pad(xt, ((0, 0), (0, 0), (0, 0), (0, cuni - Cin)))
    x2d = xt.reshape(NT, d_nodes)
    if d_nodes < D:
        x2d = jnp.pad(x2d, ((0, 0), (0, D - d_nodes)))

    # VMEM budget / tiling / pipelining decisions (static, trace-time).
    vmem_budget = _vmem_budget_bytes()
    wb_bytes = (w_fused.size * w_fused.dtype.itemsize
                + b_fused.size * b_fused.dtype.itemsize)
    # Single-buffer grid-invariant weights only when double-buffering them
    # would eat a meaningful VMEM fraction (large V*C / v7x).  At small sizes
    # the default 2-deep pipeline is kept (weights are DMA'd once regardless,
    # since their block index never changes).
    single_buffer = (2 * wb_bytes) > (vmem_budget // 4)
    resident = wb_bytes * (1 if single_buffer else 2)

    tile = _pick_tile(NT, D, G, resident, vmem_budget)
    ntp = pl.cdiv(NT, tile) * tile
    if ntp != NT:
        x2d = jnp.pad(x2d, ((0, ntp - NT), (0, 0)))
    x2d = x2d.astype(jnp.bfloat16)        # bf16 MXU operands, f32 accumulation

    pipelined = 2 * tile * D * 2 + 2 * G * tile * D * 2
    vmem_limit = int(min(vmem_budget,
                         max(32 << 20, resident + pipelined + (8 << 20))))

    wb_kw = {"pipeline_mode": pl.Buffered(1)} if single_buffer else {}
    w_spec = pl.BlockSpec((G, L, D, D), lambda i: (0, 0, 0, 0), **wb_kw)
    b_spec = pl.BlockSpec((G, L, 1, D), lambda i: (0, 0, 0, 0), **wb_kw)

    out = pl.pallas_call(
        _gcn_fused_kernel,
        out_shape=jax.ShapeDtypeStruct((G, ntp, D), jnp.bfloat16),  # bf16 out
        grid_spec=pltpu.PrefetchScalarGridSpec(
            num_scalar_prefetch=0,
            grid=(ntp // tile,),
            in_specs=[
                pl.BlockSpec((tile, D), lambda i: (i, 0)),
                w_spec,
                b_spec,
            ],
            out_specs=pl.BlockSpec((G, tile, D), lambda i: (0, i, 0)),
        ),
        compiler_params=pltpu.CompilerParams(
            dimension_semantics=("parallel",),
            vmem_limit_bytes=vmem_limit,
        ),
    )(x2d, w_fused, b_fused)

    # (G, NTp, D) -> (G, N, T, V, Cuni) -> real channels -> (N, cout, T, V, G).
    # The relayout (G ends up on the minor axis, per torch.stack(dim=-1)) runs
    # on the bf16 slab and fuses the cast back to the caller dtype, so it costs
    # half the traffic of transposing an f32 result.
    out = out[:, :NT, :d_nodes].reshape(G, N, T, V, cuni)[..., :cout]
    return jnp.transpose(out, (1, 4, 2, 3, 0)).astype(x_nctv.dtype)


# ------------------------------ parameter setup -----------------------------
def build_adjacency(mode_idx, V, K=K_SPATIAL):
    """Deterministic K-partition adjacency; differs per graph_mode index.
    # TODO(synk): graph_args not provided; stands in for Graph(**graph_args).A.
    """
    eye = jnp.eye(V, dtype=jnp.float32)
    offset = (mode_idx % max(V - 1, 1)) + 1
    ring = jnp.roll(eye, offset, axis=1) + jnp.roll(eye, -offset, axis=1)
    ring = ring / jnp.maximum(ring.sum(axis=1, keepdims=True), 1e-6)
    full = jnp.ones((V, V), jnp.float32) / V
    return jnp.stack([eye, ring, full], axis=0)  # (K, V, V)


def init_raw_params(key, in_channels, num_f_maps, graph_mode, gcn_layer, V,
                    edge_importance_weighting=True):
    params = []
    for gi in range(len(graph_mode)):
        key, sub = jax.random.split(key)
        A = build_adjacency(gi, V)
        layers = []
        cin = in_channels
        for li in range(gcn_layer):
            sub, kw = jax.random.split(sub)
            w = jax.random.normal(kw, (K_SPATIAL, cin, num_f_maps), jnp.float32)
            w = w * (1.0 / jnp.sqrt(float(cin * K_SPATIAL)))
            b = jnp.zeros((num_f_maps,), jnp.float32)
            if edge_importance_weighting:
                m = 1.0 + 0.01 * (li + 1) * jnp.arange(
                    K_SPATIAL * V * V, dtype=jnp.float32
                ).reshape(K_SPATIAL, V, V) / float(K_SPATIAL * V * V)
            else:
                m = jnp.ones((K_SPATIAL, V, V), jnp.float32)
            layers.append(dict(w=w, b=b, m=m))
            cin = num_f_maps
        params.append(dict(A=A, layers=layers))
    return params


def build_fused_params(raw_params, in_channels, num_f_maps, V):
    """Precompute Kronecker-fused (D, D) weights & lane-dense biases at init.

    D = V*Cuni rounded up to a multiple of 128 so kernel loads/stores stay
    lane-dense and the MXU N dimension is aligned for generic V, C.
    Padded rows/cols are zero, so they stay exactly zero through every layer.
    # TODO(synk): when Cuni > cout, the last layer's dead output channels are
    #   still materialized (then sliced) — trim them if that case ever matters.
    """
    G = len(raw_params)
    L = len(raw_params[0]["layers"])
    Cuni = max(in_channels, num_f_maps)
    d_nodes = V * Cuni
    D = ((d_nodes + 127) // 128) * 128
    Ws = jnp.zeros((G, L, D, D), jnp.float32)
    Bs = jnp.zeros((G, L, 1, D), jnp.float32)
    for g, p in enumerate(raw_params):
        for l, lyr in enumerate(p["layers"]):
            a_eff = p["A"] * lyr["m"]                       # (K, V, V)
            K, cin_l, cout_l = lyr["w"].shape
            wp = jnp.zeros((K, Cuni, Cuni), jnp.float32)
            wp = wp.at[:, :cin_l, :cout_l].set(lyr["w"])
            # M[v*Cuni+c, w*Cuni+d] = sum_k A_eff[k,v,w] * W[k,c,d]
            M = sum(jnp.kron(a_eff[k], wp[k]) for k in range(K))
            bp = jnp.zeros((Cuni,), jnp.float32).at[:cout_l].set(lyr["b"])
            Ws = Ws.at[g, l, :d_nodes, :d_nodes].set(M)
            Bs = Bs.at[g, l, 0, :d_nodes].set(jnp.tile(bp, V))
    return Ws.astype(jnp.bfloat16), Bs, Cuni


# ------------------------------ pure-JAX reference --------------------------
def reference_forward(raw_params, x_nctv):
    """f32 reference with the original per-partition einsum formulation."""
    N, C, T, V = x_nctv.shape
    outs = []
    for p in raw_params:
        y = jnp.transpose(x_nctv, (0, 2, 3, 1)).reshape(N * T, V, C)
        for lyr in p["layers"]:
            a_eff = p["A"] * lyr["m"]
            h = jnp.einsum("tvc,kcd->ktvd", y, lyr["w"])
            y = jnp.einsum("kvw,ktvd->twd", a_eff, h) + lyr["b"]
            y = jnp.maximum(y, 0.0)
        cout = y.shape[-1]
        outs.append(y.reshape(N, T, V, cout).transpose(0, 3, 1, 2))
    return jnp.stack(outs, axis=-1)


# ------------------------------ main -----------------------------------------
if __name__ == "__main__":
    # Small shapes consistent with the module's (N, C, T, V) convention.
    N, C_IN, T, V = 2, 4, 8, 16
    NUM_F_MAPS = 8
    GCN_LAYER = 2
    GRAPH_MODE = ["graph0", "graph1", "graph2"]   # 3 parallel SGCN branches

    key = jax.random.PRNGKey(0)
    key, kx = jax.random.split(key)
    x = jax.random.normal(kx, (N, C_IN, T, V), jnp.float32)

    raw = init_raw_params(key, C_IN, NUM_F_MAPS, GRAPH_MODE, GCN_LAYER, V,
                          edge_importance_weighting=True)
    w_fused, b_fused, cuni = build_fused_params(raw, C_IN, NUM_F_MAPS, V)

    fwd = jax.jit(functools.partial(gcn_list_forward,
                                    cout=NUM_F_MAPS, cuni=cuni, v_nodes=V))
    out = jax.block_until_ready(fwd(w_fused, b_fused, x))

    assert out.shape == (N, NUM_F_MAPS, T, V, len(GRAPH_MODE)), out.shape
    assert jnp.all(jnp.isfinite(out))

    ref = reference_forward(raw, x)
    # bf16 matmul operands + bf16 kernel output vs f32 reference -> inference-
    # grade tolerance (documented: the f32 caller dtype overstates precision).
    assert jnp.allclose(out, ref, atol=1e-1, rtol=1e-1), float(
        jnp.max(jnp.abs(out - ref)))

    print("KERNEL_OK")
</pallas_src>

<mosaic_0001>
module attributes {stable_mosaic.version = 11 : i64} {
  func.func @_gcn_fused_kernel(%arg0: i32, %arg1: memref<8x128xbf16, #tpu.memory_space<vmem>>, %arg2: memref<3x2x128x128xbf16, #tpu.memory_space<vmem>>, %arg3: memref<3x2x1x128xf32, #tpu.memory_space<vmem>>, %arg4: memref<3x8x128xbf16, #tpu.memory_space<vmem>>) attributes {dimension_semantics = [#tpu.dimension_semantics<parallel>], iteration_bounds = array<i64: 2>, scalar_prefetch = 0 : i64, scratch_operands = 0 : i64, tpu.core_type = #tpu.core_type<tc>, window_params = [{transform_indices = @transform_0, window_bounds = array<i64: 8, 128>}, {pipeline_mode = #tpu.pipeline_mode<synchronous>, transform_indices = @transform_1, window_bounds = array<i64: 3, 2, 128, 128>}, {pipeline_mode = #tpu.pipeline_mode<synchronous>, transform_indices = @transform_2, window_bounds = array<i64: 3, 2, 1, 128>}, {transform_indices = @transform_3, window_bounds = array<i64: 3, 8, 128>}]} {
    %c0 = arith.constant 0 : index
    %c0_0 = arith.constant 0 : index
    %0 = vector.load %arg1[%c0, %c0_0] : memref<8x128xbf16, #tpu.memory_space<vmem>>, vector<8x128xbf16>
    %c0_1 = arith.constant 0 : index
    %c0_2 = arith.constant 0 : index
    %c0_3 = arith.constant 0 : index
    %c0_4 = arith.constant 0 : index
    %1 = vector.load %arg2[%c0_1, %c0_2, %c0_3, %c0_4] : memref<3x2x128x128xbf16, #tpu.memory_space<vmem>>, vector<1x1x128x128xbf16>
    %2 = vector.shape_cast %1 : vector<1x1x128x128xbf16> to vector<128x128xbf16>
    %cst = arith.constant dense<0.000000e+00> : vector<8x128xf32>
    %3 = tpu.matmul %0, %2, %cst {dimension_numbers = #tpu.dot_dimension_numbers<[1], [0], [0], [1], [0, 0, 1, 1], [], []>} : vector<8x128xbf16>, vector<128x128xbf16>, vector<8x128xf32> -> vector<8x128xf32>
    %c0_5 = arith.constant 0 : index
    %c0_6 = arith.constant 0 : index
    %c0_7 = arith.constant 0 : index
    %c0_8 = arith.constant 0 : index
    %4 = vector.load %arg3[%c0_5, %c0_6, %c0_7, %c0_8] : memref<3x2x1x128xf32, #tpu.memory_space<vmem>>, vector<1x1x1x128xf32>
    %5 = vector.shape_cast %4 : vector<1x1x1x128xf32> to vector<1x128xf32>
    %6 = vector.broadcast %5 : vector<1x128xf32> to vector<8x128xf32>
    %7 = arith.addf %3, %6 : vector<8x128xf32>
    %cst_9 = arith.constant 0.000000e+00 : f32
    %8 = vector.broadcast %cst_9 : f32 to vector<8x128xf32>
    %9 = arith.maximumf %7, %8 : vector<8x128xf32>
    %10 = arith.truncf %9 : vector<8x128xf32> to vector<8x128xbf16>
    %c0_10 = arith.constant 0 : index
    %c1 = arith.constant 1 : index
    %c0_11 = arith.constant 0 : index
    %c0_12 = arith.constant 0 : index
    %11 = vector.load %arg2[%c0_10, %c1, %c0_11, %c0_12] : memref<3x2x128x128xbf16, #tpu.memory_space<vmem>>, vector<1x1x128x128xbf16>
    %12 = vector.shape_cast %11 : vector<1x1x128x128xbf16> to vector<128x128xbf16>
    %cst_13 = arith.constant dense<0.000000e+00> : vector<8x128xf32>
    %13 = tpu.matmul %10, %12, %cst_13 {dimension_numbers = #tpu.dot_dimension_numbers<[1], [0], [0], [1], [0, 0, 1, 1], [], []>} : vector<8x128xbf16>, vector<128x128xbf16>, vector<8x128xf32> -> vector<8x128xf32>
    %c0_14 = arith.constant 0 : index
    %c1_15 = arith.constant 1 : index
    %c0_16 = arith.constant 0 : index
    %c0_17 = arith.constant 0 : index
    %14 = vector.load %arg3[%c0_14, %c1_15, %c0_16, %c0_17] : memref<3x2x1x128xf32, #tpu.memory_space<vmem>>, vector<1x1x1x128xf32>
    %15 = vector.shape_cast %14 : vector<1x1x1x128xf32> to vector<1x128xf32>
    %16 = vector.broadcast %15 : vector<1x128xf32> to vector<8x128xf32>
    %17 = arith.addf %13, %16 : vector<8x128xf32>
    %cst_18 = arith.constant 0.000000e+00 : f32
    %18 = vector.broadcast %cst_18 : f32 to vector<8x128xf32>
    %19 = arith.maximumf %17, %18 : vector<8x128xf32>
    %20 = arith.truncf %19 : vector<8x128xf32> to vector<8x128xbf16>
    %c0_19 = arith.constant 0 : index
    %c0_20 = arith.constant 0 : index
    %c0_21 = arith.constant 0 : index
    %21 = vector.load %arg4[%c0_19, %c0_20, %c0_21] : memref<3x8x128xbf16, #tpu.memory_space<vmem>>, vector<1x8x128xbf16>
    %22 = vector.shape_cast %21 : vector<1x8x128xbf16> to vector<8x128xbf16>
    %23 = vector.shape_cast %20 : vector<8x128xbf16> to vector<1x8x128xbf16>
    tpu.vector_store %arg4[%c0_19, %c0_20, %c0_21], %23 {strides = array<i32>} : memref<3x8x128xbf16, #tpu.memory_space<vmem>>, vector<1x8x128xbf16>,
    %c1_22 = arith.constant 1 : index
    %c0_23 = arith.constant 0 : index
    %c0_24 = arith.constant 0 : index
    %c0_25 = arith.constant 0 : index
    %24 = vector.load %arg2[%c1_22, %c0_23, %c0_24, %c0_25] : memref<3x2x128x128xbf16, #tpu.memory_space<vmem>>, vector<1x1x128x128xbf16>
    %25 = vector.shape_cast %24 : vector<1x1x128x128xbf16> to vector<128x128xbf16>
    %cst_26 = arith.constant dense<0.000000e+00> : vector<8x128xf32>
    %26 = tpu.matmul %0, %25, %cst_26 {dimension_numbers = #tpu.dot_dimension_numbers<[1], [0], [0], [1], [0, 0, 1, 1], [], []>} : vector<8x128xbf16>, vector<128x128xbf16>, vector<8x128xf32> -> vector<8x128xf32>
    %c1_27 = arith.constant 1 : index
    %c0_28 = arith.constant 0 : index
    %c0_29 = arith.constant 0 : index
    %c0_30 = arith.constant 0 : index
    %27 = vector.load %arg3[%c1_27, %c0_28, %c0_29, %c0_30] : memref<3x2x1x128xf32, #tpu.memory_space<vmem>>, vector<1x1x1x128xf32>
    %28 = vector.shape_cast %27 : vector<1x1x1x128xf32> to vector<1x128xf32>
    %29 = vector.broadcast %28 : vector<1x128xf32> to vector<8x128xf32>
    %30 = arith.addf %26, %29 : vector<8x128xf32>
    %cst_31 = arith.constant 0.000000e+00 : f32
    %31 = vector.broadcast %cst_31 : f32 to vector<8x128xf32>
    %32 = arith.maximumf %30, %31 : vector<8x128xf32>
    %33 = arith.truncf %32 : vector<8x128xf32> to vector<8x128xbf16>
    %c1_32 = arith.constant 1 : index
    %c1_33 = arith.constant 1 : index
    %c0_34 = arith.constant 0 : index
    %c0_35 = arith.constant 0 : index
    %34 = vector.load %arg2[%c1_32, %c1_33, %c0_34, %c0_35] : memref<3x2x128x128xbf16, #tpu.memory_space<vmem>>, vector<1x1x128x128xbf16>
    %35 = vector.shape_cast %34 : vector<1x1x128x128xbf16> to vector<128x128xbf16>
    %cst_36 = arith.constant dense<0.000000e+00> : vector<8x128xf32>
    %36 = tpu.matmul %33, %35, %cst_36 {dimension_numbers = #tpu.dot_dimension_numbers<[1], [0], [0], [1], [0, 0, 1, 1], [], []>} : vector<8x128xbf16>, vector<128x128xbf16>, vector<8x128xf32> -> vector<8x128xf32>
    %c1_37 = arith.constant 1 : index
    %c1_38 = arith.constant 1 : index
    %c0_39 = arith.constant 0 : index
    %c0_40 = arith.constant 0 : index
    %37 = vector.load %arg3[%c1_37, %c1_38, %c0_39, %c0_40] : memref<3x2x1x128xf32, #tpu.memory_space<vmem>>, vector<1x1x1x128xf32>
    %38 = vector.shape_cast %37 : vector<1x1x1x128xf32> to vector<1x128xf32>
    %39 = vector.broadcast %38 : vector<1x128xf32> to vector<8x128xf32>
    %40 = arith.addf %36, %39 : vector<8x128xf32>
    %cst_41 = arith.constant 0.000000e+00 : f32
    %41 = vector.broadcast %cst_41 : f32 to vector<8x128xf32>
    %42 = arith.maximumf %40, %41 : vector<8x128xf32>
    %43 = arith.truncf %42 : vector<8x128xf32> to vector<8x128xbf16>
    %c1_42 = arith.constant 1 : index
    %c0_43 = arith.constant 0 : index
    %c0_44 = arith.constant 0 : index
    %44 = vector.load %arg4[%c1_42, %c0_43, %c0_44] : memref<3x8x128xbf16, #tpu.memory_space<vmem>>, vector<1x8x128xbf16>
    %45 = vector.shape_cast %44 : vector<1x8x128xbf16> to vector<8x128xbf16>
    %46 = vector.shape_cast %43 : vector<8x128xbf16> to vector<1x8x128xbf16>
    tpu.vector_store %arg4[%c1_42, %c0_43, %c0_44], %46 {strides = array<i32>} : memref<3x8x128xbf16, #tpu.memory_space<vmem>>, vector<1x8x128xbf16>,
    %c2 = arith.constant 2 : index
    %c0_45 = arith.constant 0 : index
    %c0_46 = arith.constant 0 : index
    %c0_47 = arith.constant 0 : index
    %47 = vector.load %arg2[%c2, %c0_45, %c0_46, %c0_47] : memref<3x2x128x128xbf16, #tpu.memory_space<vmem>>, vector<1x1x128x128xbf16>
    %48 = vector.shape_cast %47 : vector<1x1x128x128xbf16> to vector<128x128xbf16>
    %cst_48 = arith.constant dense<0.000000e+00> : vector<8x128xf32>
    %49 = tpu.matmul %0, %48, %cst_48 {dimension_numbers = #tpu.dot_dimension_numbers<[1], [0], [0], [1], [0, 0, 1, 1], [], []>} : vector<8x128xbf16>, vector<128x128xbf16>, vector<8x128xf32> -> vector<8x128xf32>
    %c2_49 = arith.constant 2 : index
    %c0_50 = arith.constant 0 : index
    %c0_51 = arith.constant 0 : index
    %c0_52 = arith.constant 0 : index
    %50 = vector.load %arg3[%c2_49, %c0_50, %c0_51, %c0_52] : memref<3x2x1x128xf32, #tpu.memory_space<vmem>>, vector<1x1x1x128xf32>
    %51 = vector.shape_cast %50 : vector<1x1x1x128xf32> to vector<1x128xf32>
    %52 = vector.broadcast %51 : vector<1x128xf32> to vector<8x128xf32>
    %53 = arith.addf %49, %52 : vector<8x128xf32>
    %cst_53 = arith.constant 0.000000e+00 : f32
    %54 = vector.broadcast %cst_53 : f32 to vector<8x128xf32>
    %55 = arith.maximumf %53, %54 : vector<8x128xf32>
    %56 = arith.truncf %55 : vector<8x128xf32> to vector<8x128xbf16>
    %c2_54 = arith.constant 2 : index
    %c1_55 = arith.constant 1 : index
    %c0_56 = arith.constant 0 : index
    %c0_57 = arith.constant 0 : index
    %57 = vector.load %arg2[%c2_54, %c1_55, %c0_56, %c0_57] : memref<3x2x128x128xbf16, #tpu.memory_space<vmem>>, vector<1x1x128x128xbf16>
    %58 = vector.shape_cast %57 : vector<1x1x128x128xbf16> to vector<128x128xbf16>
    %cst_58 = arith.constant dense<0.000000e+00> : vector<8x128xf32>
    %59 = tpu.matmul %56, %58, %cst_58 {dimension_numbers = #tpu.dot_dimension_numbers<[1], [0], [0], [1], [0, 0, 1, 1], [], []>} : vector<8x128xbf16>, vector<128x128xbf16>, vector<8x128xf32> -> vector<8x128xf32>
    %c2_59 = arith.constant 2 : index
    %c1_60 = arith.constant 1 : index
    %c0_61 = arith.constant 0 : index
    %c0_62 = arith.constant 0 : index
    %60 = vector.load %arg3[%c2_59, %c1_60, %c0_61, %c0_62] : memref<3x2x1x128xf32, #tpu.memory_space<vmem>>, vector<1x1x1x128xf32>
    %61 = vector.shape_cast %60 : vector<1x1x1x128xf32> to vector<1x128xf32>
    %62 = vector.broadcast %61 : vector<1x128xf32> to vector<8x128xf32>
    %63 = arith.addf %59, %62 : vector<8x128xf32>
    %cst_63 = arith.constant 0.000000e+00 : f32
    %64 = vector.broadcast %cst_63 : f32 to vector<8x128xf32>
    %65 = arith.maximumf %63, %64 : vector<8x128xf32>
    %66 = arith.truncf %65 : vector<8x128xf32> to vector<8x128xbf16>
    %c2_64 = arith.constant 2 : index
    %c0_65 = arith.constant 0 : index
    %c0_66 = arith.constant 0 : index
    %67 = vector.load %arg4[%c2_64, %c0_65, %c0_66] : memref<3x8x128xbf16, #tpu.memory_space<vmem>>, vector<1x8x128xbf16>
    %68 = vector.shape_cast %67 : vector<1x8x128xbf16> to vector<8x128xbf16>
    %69 = vector.shape_cast %66 : vector<8x128xbf16> to vector<1x8x128xbf16>
    tpu.vector_store %arg4[%c2_64, %c0_65, %c0_66], %69 {strides = array<i32>} : memref<3x8x128xbf16, #tpu.memory_space<vmem>>, vector<1x8x128xbf16>,
    return
  }
  func.func @transform_0(%arg0: i32) -> (i32, i32) {
    %c0_i32 = arith.constant 0 : i32
    %c0_i32_0 = arith.constant 0 : i32
    return %arg0, %c0_i32 : i32, i32
  }
  func.func @transform_1(%arg0: i32) -> (i32, i32, i32, i32) {
    %c0_i32 = arith.constant 0 : i32
    %c0_i32_0 = arith.constant 0 : i32
    %c0_i32_1 = arith.constant 0 : i32
    %c0_i32_2 = arith.constant 0 : i32
    %c0_i32_3 = arith.constant 0 : i32
    return %c0_i32, %c0_i32_0, %c0_i32_1, %c0_i32_2 : i32, i32, i32, i32
  }
  func.func @transform_2(%arg0: i32) -> (i32, i32, i32, i32) {
    %c0_i32 = arith.constant 0 : i32
    %c0_i32_0 = arith.constant 0 : i32
    %c0_i32_1 = arith.constant 0 : i32
    %c0_i32_2 = arith.constant 0 : i32
    %c0_i32_3 = arith.constant 0 : i32
    return %c0_i32, %c0_i32_0, %c0_i32_1, %c0_i32_2 : i32, i32, i32, i32
  }
  func.func @transform_3(%arg0: i32) -> (i32, i32, i32) {
    %c0_i32 = arith.constant 0 : i32
    %c0_i32_0 = arith.constant 0 : i32
    %c0_i32_1 = arith.constant 0 : i32
    return %c0_i32, %arg0, %c0_i32_0 : i32, i32, i32
  }
}

</mosaic_0001>

<bundles_post_ra>
// kernel: gcn_list_forward.1
= control target key start
LH: loop header
LB: loop body
LE: loop exit
PB: predicated region body
PF: predicated region fallthrough
CT: control target
= control target key end

     0   :  { %s1408_s12 = smov 0   ;;  %s1410_s13 = smov 0   ;;  %s1686_s0 = inlined_call_operand.vmem [shape: bf16[16,128], index: 0, kind: input, shape index: {}]   ;;  %s1687_s1 = inlined_call_operand.vmem [shape: bf16[3,2,128,128], index: 1, kind: input, shape index: {}]   ;;  %s1688_s2 = inlined_call_operand.vmem [shape: f32[3,2,1,128], index: 2, kind: input, shape index: {}]   ;;  %s1689_s3 = inlined_call_operand.vmem [shape: bf16[3,16,128], index: 3, kind: output, shape index: {}]  }
   0x1   :  { %s1412_s14 = smov 0  }
   0x2 LB: > { %s1421_s15 = sadd.s32 4294967295, %s1384_s14   ;;  %s1423_s16 = sadd.s32 1, %s1384_s14   ;;  %s1384_s14 = sphi %s1412_s14, %s1693_s14   ;;  %s1380_s13 = sphi %s1410_s13, %s1692_s13   ;;  %s1376_s12 = sphi %s1408_s12, %s1691_s12  }
   0x3   : > { %s85_s17 = ssub.s32 %s1384_s14, %s1423_s16  ;;  %s88_s18 = sadd.s32 1, %s1380_s13 }
   0x4   : > { %p86_p0 = scmp.eq.s32.totalorder %s85_s17, 0  ;;  %p98_p1 = scmp.ne.s32.totalorder %s1380_s13, %s1376_s12 }
   0x5   : > { %p99_p2 = scmp.eq.s32.totalorder %s1421_s15, 1  ;;  %p967_p3 = scmp.ge.s32.totalorder %s1384_s14, 1 }
   0x6   : > { %s1431_s19 = scalar_select %p86_p0, %s1380_s13, %s88_s18  }
   0x7   : > { %p1433_p4 = por %p99_p2, %p98_p1  ;;  %p136_p5 = scmp.lt.s32.totalorder %s1384_s14, 3 }
   0x9   : > { %p137_p6 = pnand %p967_p3, %p136_p5 }
   0xa   : > { %v1314_v0 = vld [vmem:[%s1687_s1] sm:$0xff] (!%p137_p6)   ;;  %v1386_v1 = vmov (!%p137_p6), 0.0   ;;  %v1315_v2 = vld [vmem:[%s1687_s1 + $0x8] sm:$0xff] (!%p137_p6)   ;;  %vm1387_vm0 = vmmov (!%p137_p6), 0   ;;  %v1316_v3 = vld [vmem:[%s1687_s1 + $0x10] sm:$0xff] (!%p137_p6)   ;;  %p158_p7 = scmp.lt.s32.totalorder (!%p137_p6), %s1421_s15, 1 }
   0xb   : > { %140 = sbr.rel (%p137_p6) target bundleno = 552 (0x228), region = 32  ;;  %1167 = vmatprep.subr.bf16.mxu0 (!%p137_p6), %v1386_v1  ;;  %1187 = vmatprep.subr.bf16.mxu1 (!%p137_p6), %v1386_v1  ;;  %v1317_v4 = vld [vmem:[%s1687_s1 + $0x18] sm:$0xff] (!%p137_p6)   ;;  %v1318_v5 = vld [vmem:[%s1687_s1 + $0x20] sm:$0xff] (!%p137_p6)   ;;  %v1319_v6 = vld [vmem:[%s1687_s1 + $0x28] sm:$0xff] (!%p137_p6)   ;;  %s155_s23 = sand.u32 (!%p137_p6), 1, %s1376_s12  }
   0xc   : > { %1168 = vmatpush3.bf16.msra.mxu0 (!%p137_p6), %v1314_v0  ;;  %1183 = vmatprep.mubr.msk.bf16.mxu0 (!%p137_p6), %vm1387_vm0, %v1386_v1  ;;  %v1320_v7 = vld [vmem:[%s1687_s1 + $0x30] sm:$0xff] (!%p137_p6)   ;;  %v1338_v8 = vld [vmem:[%s1687_s1 + $0x40] sm:$0xff] (!%p137_p6)   ;;  %v1321_v9 = vld [vmem:[%s1687_s1 + $0x38] sm:$0xff] (!%p137_p6)   ;;  %s1287_s26 = smul.u32 (!%p137_p6), 12, %s155_s23 }
   0xd   : > { %1169 = vmatprep.subr.bf16.mxu0 (!%p137_p6), %v1386_v1  ;;  %1203 = vmatprep.mubr.msk.bf16.mxu1 (!%p137_p6), %vm1387_vm0, %v1386_v1  ;;  %v1339_v10 = vld [vmem:[%s1687_s1 + $0x48] sm:$0xff] (!%p137_p6)   ;;  %v1322_v12 = vld [vmem:[%s1687_s1 + $0x80] sm:$0xff] (!%p137_p6)   ;;  %v1340_v13 = vld [vmem:[%s1687_s1 + $0x50] sm:$0xff] (!%p137_p6)  }
   0xe   : > { %1188 = vmatpush3.bf16.msra.mxu1 (!%p137_p6), %v1338_v8  ;;  %v1323_v14 = vld [vmem:[%s1687_s1 + $0x88] sm:$0xff] (!%p137_p6)   ;;  %v1341_v15 = vld [vmem:[%s1687_s1 + $0x58] sm:$0xff] (!%p137_p6)   ;;  %v1324_v16 = vld [vmem:[%s1687_s1 + $0x90] sm:$0xff] (!%p137_p6)   ;;  %s157_s27 = scalar_lea.vmem (!%p137_p6), [#allocation2], %s1287_s26 }
   0xf   : > { %1189 = vmatprep.subr.bf16.mxu1 (!%p137_p6), %v1386_v1  ;;  %v1342_v17 = vld [vmem:[%s1687_s1 + $0x60] sm:$0xff] (!%p137_p6)   ;;  %v1325_v18 = vld [vmem:[%s1687_s1 + $0x98] sm:$0xff] (!%p137_p6)   ;;  %v1343_v19 = vld [vmem:[%s1687_s1 + $0x68] sm:$0xff] (!%p137_p6)  }
  0x10   : > { %1170 = vmatpush3.bf16.msra.mxu0 (!%p137_p6), %v1315_v2  ;;  %v1326_v20 = vld [vmem:[%s1687_s1 + $0xa0] sm:$0xff] (!%p137_p6)   ;;  %v1327_v21 = vld [vmem:[%s1687_s1 + $0xa8] sm:$0xff] (!%p137_p6)   ;;  %v1328_v22 = vld [vmem:[%s1687_s1 + $0xb0] sm:$0xff] (!%p137_p6)  }
  0x11   : > { %1171 = vmatprep.subr.bf16.mxu0 (!%p137_p6), %v1386_v1  ;;  %v1329_v23 = vld [vmem:[%s1687_s1 + $0xb8] sm:$0xff] (!%p137_p6)   ;;  %v1330_v24 = vld [vmem:[%s1687_s1 + $0x100] sm:$0xff] (!%p137_p6)   ;;  %v1331_v25 = vld [vmem:[%s1687_s1 + $0x108] sm:$0xff] (!%p137_p6)  }
  0x12   : > { %s159_s6 = scalar_select %p158_p7, %s1421_s15, 1  ;;  %1190 = vmatpush3.bf16.msra.mxu1 %v1339_v10  ;;  %v1332_v26 = vld [vmem:[%s1687_s1 + $0x110] sm:$0xff]   ;;  %v1333_v27 = vld [vmem:[%s1687_s1 + $0x118] sm:$0xff]   ;;  %v1334_v28 = vld [vmem:[%s1687_s1 + $0x120] sm:$0xff]  }
  0x13   : > { %1191 = vmatprep.subr.bf16.mxu1 %v1386_v1  ;;  %v1335_v29 = vld [vmem:[%s1687_s1 + $0x128] sm:$0xff]   ;;  %v1336_v30 = vld [vmem:[%s1687_s1 + $0x130] sm:$0xff]   ;;  %v1337_v31 = vld [vmem:[%s1687_s1 + $0x138] sm:$0xff]   ;;  %s1110_s4 = sshll.u32 (%p1433_p4), %s1421_s15, 2 }
  0x14   : > { %1172 = vmatpush3.bf16.msra.mxu0 %v1316_v3  ;;  %s968_s9 = sshll.u32 %s159_s6, 2  ;;  %v1344_v32 = vld [vmem:[%s1687_s1 + $0x70] sm:$0xff]   ;;  %v1345_v33 = vld [vmem:[%s1687_s1 + $0x78] sm:$0xff]   ;;  %v969_v34 = vld [vmem:[%s1688_s2] ss:$0 sm:$0xff]  ;;  %s865_s7 = scalar_lea.vmem (%p1433_p4), %s1689_s3, %s1110_s4 }
  0x15   : > { %1173 = vmatprep.subr.bf16.mxu0 %v1386_v1  ;;  %s161_s22 = scalar_lea.vmem %s1686_s0, %s968_s9  ;;  %v1346_v41 = vld [vmem:[%s1687_s1 + $0xc0] sm:$0xff]   ;;  %v1347_v43 = vld [vmem:[%s1687_s1 + $0xc8] sm:$0xff]   ;;  %v1348_v44 = vld [vmem:[%s1687_s1 + $0xd0] sm:$0xff]  }
  0x16   : > { %v1486_v11 = vld [vmem:[%s161_s22] sm:$0xf]  ;;  %1192 = vmatpush3.bf16.msra.mxu1 %v1340_v13  ;;  %v1349_v45 = vld [vmem:[%s1687_s1 + $0xd8] sm:$0xff]   ;;  %v1351_v47 = vld [vmem:[%s1687_s1 + $0xe8] sm:$0xff]  }
  0x17   : > { %1193 = vmatprep.subr.bf16.mxu1 %v1386_v1  ;;  %v1350_v46 = vld [vmem:[%s1687_s1 + $0xe0] sm:$0xff]   ;;  %v1352_v48 = vld [vmem:[%s1687_s1 + $0xf0] sm:$0xff]   ;;  %v1353_v51 = vld [vmem:[%s1687_s1 + $0xf8] sm:$0xff]  }
  0x18   : > { %1174 = vmatpush3.bf16.msra.mxu0 %v1317_v4  ;;  %v1021_v49 = vld [vmem:[%s1688_s2 + $0x2] ss:$0 sm:$0xff]  ;;  %v1355_v59 = vld [vmem:[%s1687_s1 + $0x148] sm:$0xff]   ;;  %v1356_v60 = vld [vmem:[%s1687_s1 + $0x150] sm:$0xff]  }
  0x19   : > { %1175 = vmatprep.subr.bf16.mxu0 %v1386_v1  ;;  %v1354_v57 = vld [vmem:[%s1687_s1 + $0x140] sm:$0xff]   ;;  %v1357_v61 = vld [vmem:[%s1687_s1 + $0x158] sm:$0xff]   ;;  %v1359_v63 = vld [vmem:[%s1687_s1 + $0x168] sm:$0xff]  }
  0x1a   : > { %1194 = vmatpush3.bf16.msra.mxu1 %v1341_v15  ;;  %v1358_v62 = vld [vmem:[%s1687_s1 + $0x160] sm:$0xff]   ;;  %v1360_v0 = vld [vmem:[%s1687_s1 + $0x170] sm:$0xff]   ;;  %v1361_v4 = vld [vmem:[%s1687_s1 + $0x178] sm:$0xff]  }
  0x1b   : > { %1195 = vmatprep.subr.bf16.mxu1 %v1386_v1  ;;  %v1074_v2 = vld [vmem:[%s1688_s2 + $0x4] ss:$0 sm:$0xff] }
  0x1c   : > { %1176 = vmatpush3.bf16.msra.mxu0 %v1318_v5 }
  0x1d   : > { %1177 = vmatprep.subr.bf16.mxu0 %v1386_v1 }
  0x1e   : > { %1196 = vmatpush3.bf16.msra.mxu1 %v1342_v17 }
  0x1f   : > { %1197 = vmatprep.subr.bf16.mxu1 %v1386_v1 }
  0x20   : > { %1178 = vmatpush3.bf16.msra.mxu0 %v1319_v6 }
  0x21   : > { %1179 = vmatprep.subr.bf16.mxu0 %v1386_v1 }
  0x22   : > { %1198 = vmatpush3.bf16.msra.mxu1 %v1343_v19 }
  0x23   : > { %1199 = vmatprep.subr.bf16.mxu1 %v1386_v1 }
  0x24   : > { %1180 = vmatpush3.bf16.msra.mxu0 %v1320_v7 }
  0x25   : > { %1181 = vmatprep.subr.bf16.mxu0 %v1386_v1 }
  0x26   : > { %1200 = vmatpush3.bf16.msra.mxu1 %v1344_v32 }
  0x27   : > { %1201 = vmatprep.subr.bf16.mxu1 %v1386_v1 }
  0x28   : > { %1182 = vmatpush3.bf16.msra.mxu0 %v1321_v9 }
  0x29   : > { %1207 = vmatprep.subr.bf16.mxu0 %v1386_v1 }
  0x2a   : > { %1202 = vmatpush3.bf16.msra.mxu1 %v1345_v33 }
  0x2b   : > { %1184 = vmatmul.mubr.bf16.vlgmr.msra.gmra.mrb[0].mxu0 %v1486_v11  ;;  %1227 = vmatprep.subr.bf16.mxu1 %v1386_v1 }
  0x2c   : > { %1208 = vmatpush3.bf16.msra.mxu0 %v1322_v12  ;;  %1223 = vmatprep.mubr.msk.bf16.mxu0 %vm1387_vm0, %v1386_v1 }
  0x2d   : > { %1209 = vmatprep.subr.bf16.mxu0 %v1386_v1 }
  0x30   : > { %1210 = vmatpush3.bf16.msra.mxu0 %v1323_v14 }
  0x31   : > { %1211 = vmatprep.subr.bf16.mxu0 %v1386_v1 }
  0x34   : > { %1212 = vmatpush3.bf16.msra.mxu0 %v1324_v16 }
  0x35   : > { %1213 = vmatprep.subr.bf16.mxu0 %v1386_v1 }
  0x38   : > { %1214 = vmatpush3.bf16.msra.mxu0 %v1325_v18 }
  0x39   : > { %1215 = vmatprep.subr.bf16.mxu0 %v1386_v1 }
  0x3c   : > { %1216 = vmatpush3.bf16.msra.mxu0 %v1326_v20 }
  0x3d   : > { %1217 = vmatprep.subr.bf16.mxu0 %v1386_v1 }
  0x40   : > { %1218 = vmatpush3.bf16.msra.mxu0 %v1327_v21 }
  0x41   : > { %1219 = vmatprep.subr.bf16.mxu0 %v1386_v1 }
  0x44   : > { %1220 = vmatpush3.bf16.msra.mxu0 %v1328_v22 }
  0x45   : > { %1221 = vmatprep.subr.bf16.mxu0 %v1386_v1 }
  0x48   : > { %1222 = vmatpush3.bf16.msra.mxu0 %v1329_v23 }
  0x49   : > { %1247 = vmatprep.subr.bf16.mxu0 %v1386_v1 }
  0x4b   : > { %1224 = vmatmul.mubr.bf16.vlgmr.msra.gmra.mrb[4].mxu0 %v1486_v11 }
  0x4c   : > { %1248 = vmatpush3.bf16.msra.mxu0 %v1330_v24  ;;  %1263 = vmatprep.mubr.msk.bf16.mxu0 %vm1387_vm0, %v1386_v1 }
  0x4d   : > { %1249 = vmatprep.subr.bf16.mxu0 %v1386_v1 }
  0x50   : > { %1250 = vmatpush3.bf16.msra.mxu0 %v1331_v25 }
  0x51   : > { %1251 = vmatprep.subr.bf16.mxu0 %v1386_v1 }
  0x54   : > { %1252 = vmatpush3.bf16.msra.mxu0 %v1332_v26  ;;  %v1100_v26 = vld [vmem:[%s1688_s2 + $0x5] ss:$0 sm:$0xff] }
  0x55   : > { %1253 = vmatprep.subr.bf16.mxu0 %v1386_v1 }
  0x58   : > { %1254 = vmatpush3.bf16.msra.mxu0 %v1333_v27 }
  0x59   : > { %1255 = vmatprep.subr.bf16.mxu0 %v1386_v1 }
  0x5c   : > { %1256 = vmatpush3.bf16.msra.mxu0 %v1334_v28 }
  0x5d   : > { %1257 = vmatprep.subr.bf16.mxu0 %v1386_v1 }
  0x60   : > { %1258 = vmatpush3.bf16.msra.mxu0 %v1335_v29 }
  0x61   : > { %1259 = vmatprep.subr.bf16.mxu0 %v1386_v1 }
  0x64   : > { %1260 = vmatpush3.bf16.msra.mxu0 %v1336_v30 }
  0x65   : > { %1261 = vmatprep.subr.bf16.mxu0 %v1386_v1 }
  0x68   : > { %1262 = vmatpush3.bf16.msra.mxu0 %v1337_v31 }
  0x6b   : > { %1264 = vmatmul.mubr.bf16.vlgmr.msra.gmra.mrb[8].mxu0 %v1486_v11  ;;  %v995_v11 = vld [vmem:[%s1688_s2 + $0x1] ss:$0 sm:$0xff] }
  0xfe   : > { %v269_v35 = vpop.f32.mrb[0].mxu0 }
  0xff   : > { %v270_v36 = vadd.f32 %v969_v34, %v269_v35  ;;  %v1185_v37 = vpop.f32.mrb[1].mxu0 }
 0x100   : > { %v272_v38 = vpop.f32.mrb[2].mxu0 }
 0x101   : > { %v275_v39 = vmax.f32 %v270_v36, 0.0  ;;  %v1186_v40 = vpop.f32.mrb[3].mxu0 }
 0x103   : > { %v276_v42 = vpack.c.bf16 %v275_v39, %v275_v39 }
 0x105   : > { %1204 = vmatmul.mubr.bf16.vlgmr.msra.gmra.mrb[0].mxu1 %v276_v42 }
 0x106   : > { %1228 = vmatpush3.bf16.msra.mxu1 %v1346_v41  ;;  %1243 = vmatprep.mubr.msk.bf16.mxu1 %vm1387_vm0, %v1386_v1 }
 0x107   : > { %1229 = vmatprep.subr.bf16.mxu1 %v1386_v1 }
 0x10a   : > { %1230 = vmatpush3.bf16.msra.mxu1 %v1347_v43 }
 0x10b   : > { %1231 = vmatprep.subr.bf16.mxu1 %v1386_v1 }
 0x10e   : > { %1232 = vmatpush3.bf16.msra.mxu1 %v1348_v44 }
 0x10f   : > { %1233 = vmatprep.subr.bf16.mxu1 %v1386_v1 }
 0x112   : > { %1234 = vmatpush3.bf16.msra.mxu1 %v1349_v45 }
 0x113   : > { %1235 = vmatprep.subr.bf16.mxu1 %v1386_v1 }
 0x116   : > { %1236 = vmatpush3.bf16.msra.mxu1 %v1350_v46 }
 0x117   : > { %1237 = vmatprep.subr.bf16.mxu1 %v1386_v1 }
 0x11a   : > { %1238 = vmatpush3.bf16.msra.mxu1 %v1351_v47 }
 0x11b   : > { %1239 = vmatprep.subr.bf16.mxu1 %v1386_v1 }
 0x11e   : > { %v500_v50 = vpop.f32.mrb[4].mxu0  ;;  %1240 = vmatpush3.bf16.msra.mxu1 %v1352_v48 }
 0x11f   : > { %v501_v52 = vadd.f32 %v1021_v49, %v500_v50  ;;  %v1225_v53 = vpop.f32.mrb[5].mxu0  ;;  %1241 = vmatprep.subr.bf16.mxu1 %v1386_v1 }
 0x120   : > { %v503_v54 = vpop.f32.mrb[6].mxu0 }
 0x121   : > { %v506_v55 = vmax.f32 %v501_v52, 0.0  ;;  %v1226_v56 = vpop.f32.mrb[7].mxu0 }
 0x122   : > { %1242 = vmatpush3.bf16.msra.mxu1 %v1353_v51 }
 0x123   : > { %v507_v58 = vpack.c.bf16 %v506_v55, %v506_v55  ;;  %1267 = vmatprep.subr.bf16.mxu1 %v1386_v1 }
 0x125   : > { %1244 = vmatmul.mubr.bf16.vlgmr.msra.gmra.mrb[4].mxu1 %v507_v58 }
 0x126   : > { %1268 = vmatpush3.bf16.msra.mxu1 %v1354_v57  ;;  %1283 = vmatprep.mubr.msk.bf16.mxu1 %vm1387_vm0, %v1386_v1 }
 0x127   : > { %1269 = vmatprep.subr.bf16.mxu1 %v1386_v1 }
 0x12a   : > { %1270 = vmatpush3.bf16.msra.mxu1 %v1355_v59 }
 0x12b   : > { %1271 = vmatprep.subr.bf16.mxu1 %v1386_v1 }
 0x12e   : > { %1272 = vmatpush3.bf16.msra.mxu1 %v1356_v60 }
 0x12f   : > { %1273 = vmatprep.subr.bf16.mxu1 %v1386_v1 }
 0x132   : > { %1274 = vmatpush3.bf16.msra.mxu1 %v1357_v61 }
 0x133   : > { %1275 = vmatprep.subr.bf16.mxu1 %v1386_v1 }
 0x136   : > { %1276 = vmatpush3.bf16.msra.mxu1 %v1358_v62 }
 0x137   : > { %1277 = vmatprep.subr.bf16.mxu1 %v1386_v1 }
 0x13a   : > { %1278 = vmatpush3.bf16.msra.mxu1 %v1359_v63 }
 0x13b   : > { %1279 = vmatprep.subr.bf16.mxu1 %v1386_v1 }
 0x13e   : > { %v732_v3 = vpop.f32.mrb[8].mxu0  ;;  %1280 = vmatpush3.bf16.msra.mxu1 %v1360_v0 }
 0x13f   : > { %v733_v5 = vadd.f32 %v1074_v2, %v732_v3  ;;  %v1265_v6 = vpop.f32.mrb[9].mxu0  ;;  %1281 = vmatprep.subr.bf16.mxu1 %v1386_v1  ;;  %v1047_v1 = vld [vmem:[%s1688_s2 + $0x3] ss:$0 sm:$0xff] }
 0x140   : > { %v735_v7 = vpop.f32.mrb[10].mxu0 }
 0x141   : > { %v738_v8 = vmax.f32 %v733_v5, 0.0  ;;  %v1266_v9 = vpop.f32.mrb[11].mxu0 }
 0x142   : > { %1282 = vmatpush3.bf16.msra.mxu1 %v1361_v4 }
 0x143   : > { %v739_v10 = vpack.c.bf16 %v738_v8, %v738_v8 }
 0x145   : > { %1284 = vmatmul.mubr.bf16.vlgmr.msra.gmra.mrb[8].mxu1 %v739_v10 }
 0x1d8   : > { %v384_v12 = vpop.f32.mrb[0].mxu1 }
 0x1d9   : > { %v385_v13 = vadd.f32 %v995_v11, %v384_v12  ;;  %v1205_v14 = vpop.f32.mrb[1].mxu1 }
 0x1da   : > { %v387_v15 = vpop.f32.mrb[2].mxu1 }
 0x1db   : > { %v390_v16 = vmax.f32 %v385_v13, 0.0  ;;  %v1206_v17 = vpop.f32.mrb[3].mxu1 }
 0x1dd   : > { %v391_v18 = vpack.c.bf16 %v390_v16, %v390_v16 }
 0x1df   : > { %392 = vst [vmem:[%s157_s27] sm:$0xf] %v391_v18 }
 0x1e6   : > { %v881_v34 = vld [vmem:[%s157_s27] sm:$0xf] (%p1433_p4) }
 0x1e7   : > { %882 = vst [vmem:[%s865_s7] sm:$0xf] (%p1433_p4), %v881_v34 }
 0x1f8   : > { %v615_v19 = vpop.f32.mrb[4].mxu1 }
 0x1f9   : > { %v616_v20 = vadd.f32 %v1047_v1, %v615_v19  ;;  %v1245_v21 = vpop.f32.mrb[5].mxu1 }
 0x1fa   : > { %v618_v22 = vpop.f32.mrb[6].mxu1 }
 0x1fb   : > { %v621_v23 = vmax.f32 %v616_v20, 0.0  ;;  %v1246_v24 = vpop.f32.mrb[7].mxu1 }
 0x1fd   : > { %v622_v25 = vpack.c.bf16 %v621_v23, %v621_v23 }
 0x1ff   : > { %1056 = vst [vmem:[%s157_s27 + $0x4] sm:$0xf] %v622_v25 }
 0x206   : > { %v883_v35 = vld [vmem:[%s157_s27 + $0x4] sm:$0xf] (%p1433_p4) }
 0x207   : > { %884 = vst [vmem:[%s865_s7 + $0x8] sm:$0xf] (%p1433_p4), %v883_v35 }
 0x218   : > { %v847_v27 = vpop.f32.mrb[8].mxu1 }
 0x219   : > { %v848_v28 = vadd.f32 %v1100_v26, %v847_v27  ;;  %v1285_v29 = vpop.f32.mrb[9].mxu1  ;;  %863 = sbr.rel (!%p1433_p4) target bundleno = 552 (0x228), region = 36 }
 0x21a   : > { %v850_v30 = vpop.f32.mrb[10].mxu1 }
 0x21b   : > { %v853_v31 = vmax.f32 %v848_v28, 0.0  ;;  %v1286_v32 = vpop.f32.mrb[11].mxu1 }
 0x21d   : > { %v854_v33 = vpack.c.bf16 %v853_v31, %v853_v31 }
 0x21f   : > { %1109 = vst [vmem:[%s157_s27 + $0x8] sm:$0xf] %v854_v33 }
 0x226   : > { %v885_v36 = vld [vmem:[%s157_s27 + $0x8] sm:$0xf] }
 0x227   : > { %886 = vst [vmem:[%s865_s7 + $0x10] sm:$0xf] %v885_v36 }
 0x228 PF: > { %p10_p8 = scmp.ge.s32.totalorder %s1423_s16, 4   ;;  %s1691_s12 = smov %s1380_s13 }
 0x229   : > { %s1692_s13 = smov %s1431_s19  ;;  %s1693_s14 = smov %s1423_s16 }
 0x22a   :  { %12 = sbr.rel (!%p10_p8) target bundleno = 2 (0x2), region = 115 }

</bundles_post_ra>
